<compile_context>
chip_gen: v7x
topology: tpu7x:2x2x1
jax: 0.10.0
libtpu: 0.0.40
codegen_flags: <defaults>
</compile_context>

<pallas_src>
import jax
import jax.numpy as jnp
from jax.experimental import pallas as pl
from jax.experimental.pallas import tpu as pltpu

NUM_CLASSES = 3          # from LaneCuttingDetector(num_classes=3)
IN_FEATURES = 1024       # fasterrcnn_resnet50_fpn box_head representation size
PAD = 128                # single lane-dense output slab
CLS_OFF = 0              # lanes [0, 3)   -> class logits
BOX_OFF = NUM_CLASSES    # lanes [3, 15)  -> box deltas
PROB_OFF = 16            # lanes [16, 19) -> softmax probs (fused epilogue)
SCORE_LANE = 19          # lane 19        -> max foreground prob
LABEL_LANE = 20          # lane 20        -> foreground label (1.0 or 2.0)


def _round_up(x, m):
    return (x + m - 1) // m * m


def pack_predictor_params(w_cls, b_cls, w_box, b_box):
    """Pack cls + box heads into one [K, 128] bf16 weight and one f32 bias row.

    Hoisted out of the per-call path: build once at model setup, reuse on every
    forward (constant-index resident operand of pallas_call). Lanes >= 15 are
    exactly zero so the kernel epilogue can add into them.
    """
    K = w_cls.shape[0]
    w = jnp.zeros((K, PAD), jnp.float32)
    w = w.at[:, CLS_OFF:CLS_OFF + NUM_CLASSES].set(w_cls)
    w = w.at[:, BOX_OFF:BOX_OFF + 4 * NUM_CLASSES].set(w_box)
    b = jnp.zeros((1, PAD), jnp.float32)
    b = b.at[0, CLS_OFF:CLS_OFF + NUM_CLASSES].set(b_cls)
    b = b.at[0, BOX_OFF:BOX_OFF + 4 * NUM_CLASSES].set(b_box)
    # bf16 weights: MXU-native, halves weight DMA; accumulation stays f32.
    return w.astype(jnp.bfloat16), b


def _predictor_kernel(x_ref, w_ref, b_ref, out_ref):
    """Fused FastRCNNPredictor: packed bf16 matmul (f32 acc) + bias
    + 3-class softmax + foreground score/label, all in one output slab."""
    # In-kernel bf16 cast: x stays f32 in HBM (no wrapper cast materialization).
    x = x_ref[...].astype(jnp.bfloat16)
    acc = jnp.dot(x, w_ref[...], preferred_element_type=jnp.float32) + b_ref[...]
    # acc lanes: [0,3) cls logits, [3,15) box deltas, [15,128) exact zeros.

    lane = jax.lax.broadcasted_iota(jnp.int32, acc.shape, 1)
    is_cls = lane < NUM_CLASSES

    # Fused 3-class softmax (exp on EUP, lane reductions on XLU: free under DMA).
    masked = jnp.where(is_cls, acc, -jnp.inf)
    m = jnp.max(masked, axis=-1, keepdims=True)
    e = jnp.where(is_cls, jnp.exp(acc - m), 0.0)
    denom = jnp.sum(e, axis=-1, keepdims=True)
    probs = e * pl.reciprocal(denom, approx=True)

    p0 = jnp.sum(jnp.where(lane == 0, probs, 0.0), axis=-1, keepdims=True)
    p1 = jnp.sum(jnp.where(lane == 1, probs, 0.0), axis=-1, keepdims=True)
    p2 = jnp.sum(jnp.where(lane == 2, probs, 0.0), axis=-1, keepdims=True)

    out = acc
    out = out + jnp.where(lane == PROB_OFF + 0, p0, 0.0)
    out = out + jnp.where(lane == PROB_OFF + 1, p1, 0.0)
    out = out + jnp.where(lane == PROB_OFF + 2, p2, 0.0)
    out = out + jnp.where(lane == SCORE_LANE, jnp.maximum(p1, p2), 0.0)
    out = out + jnp.where(lane == LABEL_LANE,
                          jnp.where(p2 > p1, 2.0, 1.0), 0.0)
    out_ref[...] = out.astype(out_ref.dtype)   # bf16 writeback (half traffic)


def _choose_tm(R):
    # Small R (<= 512): one grid step. Per-step overhead (~0.35 us) dwarfs the
    # matmul; single-TC v5e/v6e gain nothing from splitting, and even v7x's
    # megacore split only pays once per-tile work >> step overhead.
    if R <= 512:
        return max(16, _round_up(R, 16))        # 16-row (bf16 tile) alignment
    # Large R: big tiles (512-1024 rows ~ 85% of HBM roofline) but keep >= 2
    # blocks so dimension_semantics=("parallel",) feeds both v7x TensorCores.
    return min(1024, _round_up((R + 1) // 2, 16))


def fastrcnn_predictor(roi_feats, w_packed, b_packed, *, tm=None):
    """roi_feats: [R, IN_FEATURES] f32.  Returns the packed [R, 128] bf16 slab."""
    R, K = roi_feats.shape
    assert K == IN_FEATURES
    if tm is None:
        tm = _choose_tm(R)

    grid = (pl.cdiv(R, tm),)   # ragged last block is masked by Pallas; no jnp.pad

    cost = pl.CostEstimate(
        flops=2 * R * K * PAD,
        transcendentals=R * NUM_CLASSES,
        bytes_accessed=4 * R * K + 2 * K * PAD + 4 * PAD + 2 * R * PAD,
    )

    out = pl.pallas_call(
        _predictor_kernel,
        out_shape=jax.ShapeDtypeStruct((R, PAD), jnp.bfloat16),
        grid_spec=pltpu.PrefetchScalarGridSpec(
            num_scalar_prefetch=0,
            grid=grid,
            in_specs=[pl.BlockSpec((tm, K), lambda i: (i, 0)),
                      pl.BlockSpec((K, PAD), lambda i: (0, 0)),
                      pl.BlockSpec((1, PAD), lambda i: (0, 0))],
            out_specs=pl.BlockSpec((tm, PAD), lambda i: (i, 0)),
        ),
        compiler_params=pltpu.CompilerParams(
            dimension_semantics=("parallel",)),
        cost_estimate=cost,
    )(roi_feats, w_packed, b_packed)
    return out


def lane_cutting_detector_forward(images, roi_feats, packed_params):
    """Inference path of LaneCuttingDetector.forward (eval / no targets).

    # TODO(synk): ResNet50-FPN backbone, RPN proposal generation, ROIAlign and
    # the TwoMLPHead have no clean single Pallas kernel equivalent here; this
    # function consumes precomputed per-ROI 1024-d features instead.
    """
    slab = fastrcnn_predictor(
        roi_feats, packed_params["w_packed"], packed_params["b_packed"])

    logits = slab[:, CLS_OFF:CLS_OFF + NUM_CLASSES].astype(jnp.float32)
    deltas = slab[:, BOX_OFF:BOX_OFF + 4 * NUM_CLASSES].astype(jnp.float32)
    probs = slab[:, PROB_OFF:PROB_OFF + NUM_CLASSES].astype(jnp.float32)
    scores = slab[:, SCORE_LANE].astype(jnp.float32)
    labels = slab[:, LABEL_LANE].astype(jnp.int32)
    # TODO(synk): box delta decoding against proposals, score thresholding and
    # per-class NMS are data-dependent ragged ops, left out of the kernel.
    return {"boxes_deltas": deltas, "scores": scores, "labels": labels,
            "cls_logits": logits, "cls_probs": probs}


if __name__ == "__main__":
    key = jax.random.PRNGKey(0)
    k_img, k_feat, k1, k2, k3, k4 = jax.random.split(key, 6)

    # Small deterministic inputs: a batch of 2 images (shape only used by the
    # untranslated backbone stage) and 16 ROI features of size 1024.
    images = jax.random.normal(k_img, (2, 3, 64, 64), jnp.float32)   # NCHW
    R = 16
    roi_feats = jax.random.normal(k_feat, (R, IN_FEATURES), jnp.float32)

    # Deterministic FastRCNNPredictor parameters (synthetic, not a checkpoint).
    params = {
        "w_cls": 0.02 * jax.random.normal(k1, (IN_FEATURES, NUM_CLASSES), jnp.float32),
        "b_cls": 0.01 * jax.random.normal(k2, (NUM_CLASSES,), jnp.float32),
        "w_box": 0.02 * jax.random.normal(k3, (IN_FEATURES, 4 * NUM_CLASSES), jnp.float32),
        "b_box": 0.01 * jax.random.normal(k4, (4 * NUM_CLASSES,), jnp.float32),
    }

    # Weight packing / bf16 cast done ONCE at setup (hoisted).
    w_packed, b_packed = pack_predictor_params(
        params["w_cls"], params["b_cls"], params["w_box"], params["b_box"])
    packed_params = {"w_packed": w_packed, "b_packed": b_packed}

    preds = lane_cutting_detector_forward(images, roi_feats, packed_params)
    jax.block_until_ready(preds)

    # Reference check #1: bf16-faithful reference (same bf16 operands, f32 acc).
    xb = roi_feats.astype(jnp.bfloat16)
    ref_logits_bf = jnp.dot(xb, params["w_cls"].astype(jnp.bfloat16),
                            preferred_element_type=jnp.float32) + params["b_cls"]
    ref_deltas_bf = jnp.dot(xb, params["w_box"].astype(jnp.bfloat16),
                            preferred_element_type=jnp.float32) + params["b_box"]
    ref_probs_bf = jax.nn.softmax(ref_logits_bf, axis=-1)
    assert jnp.allclose(preds["cls_logits"], ref_logits_bf, atol=1e-2, rtol=1e-2)
    assert jnp.allclose(preds["boxes_deltas"], ref_deltas_bf, atol=1e-2, rtol=1e-2)
    assert jnp.allclose(preds["cls_probs"], ref_probs_bf, atol=1e-2, rtol=1e-2)

    # Fused post-processing check (foreground score / label, background dropped).
    fg = ref_probs_bf[:, 1:]
    ref_scores = jnp.max(fg, axis=-1)
    ref_labels = jnp.argmax(fg, axis=-1) + 1
    assert jnp.allclose(preds["scores"], ref_scores, atol=1e-2, rtol=1e-2)
    clear = jnp.abs(fg[:, 1] - fg[:, 0]) > 1e-3   # ignore numerical near-ties
    assert bool(jnp.all(jnp.where(clear, preds["labels"] == ref_labels, True)))

    # Reference check #2: coarse sanity vs full-f32 reference (bf16 operand +
    # output rounding over the K=1024 reduction bounds the error to a few 1e-3).
    ref_logits = roi_feats @ params["w_cls"] + params["b_cls"]
    ref_deltas = roi_feats @ params["w_box"] + params["b_box"]
    ref_probs = jax.nn.softmax(ref_logits, axis=-1)
    assert jnp.allclose(preds["cls_logits"], ref_logits, atol=5e-2, rtol=5e-2)
    assert jnp.allclose(preds["boxes_deltas"], ref_deltas, atol=5e-2, rtol=5e-2)
    assert jnp.allclose(preds["cls_probs"], ref_probs, atol=5e-2, rtol=5e-2)

    print("KERNEL_OK")
</pallas_src>

<mosaic_0001>
module attributes {stable_mosaic.version = 11 : i64} {
  func.func @_predictor_kernel(%arg0: i32, %arg1: memref<16x1024xf32, #tpu.memory_space<vmem>>, %arg2: memref<1024x128xbf16, #tpu.memory_space<vmem>>, %arg3: memref<1x128xf32, #tpu.memory_space<vmem>>, %arg4: memref<16x128xbf16, #tpu.memory_space<vmem>>) attributes {dimension_semantics = [#tpu.dimension_semantics<parallel>], iteration_bounds = array<i64: 1>, scalar_prefetch = 0 : i64, scratch_operands = 0 : i64, tpu.core_type = #tpu.core_type<tc>, window_params = [{transform_indices = @transform_0, window_bounds = array<i64: 16, 1024>}, {pipeline_mode = #tpu.pipeline_mode<synchronous>, transform_indices = @transform_1, window_bounds = array<i64: 1024, 128>}, {pipeline_mode = #tpu.pipeline_mode<synchronous>, transform_indices = @transform_2, window_bounds = array<i64: 1, 128>}, {transform_indices = @transform_3, window_bounds = array<i64: 16, 128>}]} {
    %c0 = arith.constant 0 : index
    %c0_0 = arith.constant 0 : index
    %0 = vector.load %arg1[%c0, %c0_0] : memref<16x1024xf32, #tpu.memory_space<vmem>>, vector<16x1024xf32>
    %1 = arith.truncf %0 : vector<16x1024xf32> to vector<16x1024xbf16>
    %c0_1 = arith.constant 0 : index
    %c0_2 = arith.constant 0 : index
    %2 = vector.load %arg2[%c0_1, %c0_2] : memref<1024x128xbf16, #tpu.memory_space<vmem>>, vector<1024x128xbf16>
    %cst = arith.constant dense<0.000000e+00> : vector<16x128xf32>
    %3 = tpu.matmul %1, %2, %cst {dimension_numbers = #tpu.dot_dimension_numbers<[1], [0], [0], [1], [0, 0, 1, 1], [], []>} : vector<16x1024xbf16>, vector<1024x128xbf16>, vector<16x128xf32> -> vector<16x128xf32>
    %c0_3 = arith.constant 0 : index
    %c0_4 = arith.constant 0 : index
    %4 = vector.load %arg3[%c0_3, %c0_4] : memref<1x128xf32, #tpu.memory_space<vmem>>, vector<1x128xf32>
    %5 = vector.broadcast %4 : vector<1x128xf32> to vector<16x128xf32>
    %6 = arith.addf %3, %5 : vector<16x128xf32>
    %7 = tpu.iota {dimensions = array<i32: 1>} : vector<16x128xi32>
    %c3_i32 = arith.constant 3 : i32
    %8 = vector.broadcast %c3_i32 : i32 to vector<16x128xi32>
    %9 = arith.cmpi slt, %7, %8 : vector<16x128xi32>
    %cst_5 = arith.constant 0xFF800000 : f32
    %10 = vector.broadcast %cst_5 : f32 to vector<16x128xf32>
    %11 = arith.select %9, %6, %10 : vector<16x128xi1>, vector<16x128xf32>
    %cst_6 = arith.constant dense<0xFF800000> : vector<16xf32>
    %12 = vector.multi_reduction <maximumf>, %11, %cst_6 [1] : vector<16x128xf32> to vector<16xf32>
    %13 = vector.shape_cast %12 : vector<16xf32> to vector<16x1xf32>
    %14 = vector.broadcast %13 : vector<16x1xf32> to vector<16x128xf32>
    %15 = arith.subf %6, %14 : vector<16x128xf32>
    %16 = math.exp %15 : vector<16x128xf32>
    %cst_7 = arith.constant 0.000000e+00 : f32
    %17 = vector.broadcast %cst_7 : f32 to vector<16x128xf32>
    %18 = arith.select %9, %16, %17 : vector<16x128xi1>, vector<16x128xf32>
    %cst_8 = arith.constant dense<0.000000e+00> : vector<16xf32>
    %19 = vector.multi_reduction <add>, %18, %cst_8 [1] : vector<16x128xf32> to vector<16xf32>
    %20 = vector.shape_cast %19 : vector<16xf32> to vector<16x1xf32>
    %21 = tpu.reciprocal %20 {approx = true} : vector<16x1xf32> -> vector<16x1xf32>
    %22 = vector.broadcast %21 : vector<16x1xf32> to vector<16x128xf32>
    %23 = arith.mulf %18, %22 : vector<16x128xf32>
    %c0_i32 = arith.constant 0 : i32
    %24 = vector.broadcast %c0_i32 : i32 to vector<16x128xi32>
    %25 = arith.cmpi eq, %7, %24 : vector<16x128xi32>
    %cst_9 = arith.constant 0.000000e+00 : f32
    %26 = vector.broadcast %cst_9 : f32 to vector<16x128xf32>
    %27 = arith.select %25, %23, %26 : vector<16x128xi1>, vector<16x128xf32>
    %cst_10 = arith.constant dense<0.000000e+00> : vector<16xf32>
    %28 = vector.multi_reduction <add>, %27, %cst_10 [1] : vector<16x128xf32> to vector<16xf32>
    %29 = vector.shape_cast %28 : vector<16xf32> to vector<16x1xf32>
    %c1_i32 = arith.constant 1 : i32
    %30 = vector.broadcast %c1_i32 : i32 to vector<16x128xi32>
    %31 = arith.cmpi eq, %7, %30 : vector<16x128xi32>
    %cst_11 = arith.constant 0.000000e+00 : f32
    %32 = vector.broadcast %cst_11 : f32 to vector<16x128xf32>
    %33 = arith.select %31, %23, %32 : vector<16x128xi1>, vector<16x128xf32>
    %cst_12 = arith.constant dense<0.000000e+00> : vector<16xf32>
    %34 = vector.multi_reduction <add>, %33, %cst_12 [1] : vector<16x128xf32> to vector<16xf32>
    %35 = vector.shape_cast %34 : vector<16xf32> to vector<16x1xf32>
    %c2_i32 = arith.constant 2 : i32
    %36 = vector.broadcast %c2_i32 : i32 to vector<16x128xi32>
    %37 = arith.cmpi eq, %7, %36 : vector<16x128xi32>
    %cst_13 = arith.constant 0.000000e+00 : f32
    %38 = vector.broadcast %cst_13 : f32 to vector<16x128xf32>
    %39 = arith.select %37, %23, %38 : vector<16x128xi1>, vector<16x128xf32>
    %cst_14 = arith.constant dense<0.000000e+00> : vector<16xf32>
    %40 = vector.multi_reduction <add>, %39, %cst_14 [1] : vector<16x128xf32> to vector<16xf32>
    %41 = vector.shape_cast %40 : vector<16xf32> to vector<16x1xf32>
    %c16_i32 = arith.constant 16 : i32
    %42 = vector.broadcast %c16_i32 : i32 to vector<16x128xi32>
    %43 = arith.cmpi eq, %7, %42 : vector<16x128xi32>
    %cst_15 = arith.constant 0.000000e+00 : f32
    %44 = vector.shape_cast %29 : vector<16x1xf32> to vector<16x1xf32>
    %45 = vector.broadcast %44 : vector<16x1xf32> to vector<16x128xf32>
    %46 = vector.broadcast %cst_15 : f32 to vector<16x128xf32>
    %47 = arith.select %43, %45, %46 : vector<16x128xi1>, vector<16x128xf32>
    %48 = arith.addf %6, %47 : vector<16x128xf32>
    %c17_i32 = arith.constant 17 : i32
    %49 = vector.broadcast %c17_i32 : i32 to vector<16x128xi32>
    %50 = arith.cmpi eq, %7, %49 : vector<16x128xi32>
    %cst_16 = arith.constant 0.000000e+00 : f32
    %51 = vector.shape_cast %35 : vector<16x1xf32> to vector<16x1xf32>
    %52 = vector.broadcast %51 : vector<16x1xf32> to vector<16x128xf32>
    %53 = vector.broadcast %cst_16 : f32 to vector<16x128xf32>
    %54 = arith.select %50, %52, %53 : vector<16x128xi1>, vector<16x128xf32>
    %55 = arith.addf %48, %54 : vector<16x128xf32>
    %c18_i32 = arith.constant 18 : i32
    %56 = vector.broadcast %c18_i32 : i32 to vector<16x128xi32>
    %57 = arith.cmpi eq, %7, %56 : vector<16x128xi32>
    %cst_17 = arith.constant 0.000000e+00 : f32
    %58 = vector.shape_cast %41 : vector<16x1xf32> to vector<16x1xf32>
    %59 = vector.broadcast %58 : vector<16x1xf32> to vector<16x128xf32>
    %60 = vector.broadcast %cst_17 : f32 to vector<16x128xf32>
    %61 = arith.select %57, %59, %60 : vector<16x128xi1>, vector<16x128xf32>
    %62 = arith.addf %55, %61 : vector<16x128xf32>
    %c19_i32 = arith.constant 19 : i32
    %63 = vector.broadcast %c19_i32 : i32 to vector<16x128xi32>
    %64 = arith.cmpi eq, %7, %63 : vector<16x128xi32>
    %65 = arith.maximumf %35, %41 : vector<16x1xf32>
    %cst_18 = arith.constant 0.000000e+00 : f32
    %66 = vector.shape_cast %65 : vector<16x1xf32> to vector<16x1xf32>
    %67 = vector.broadcast %66 : vector<16x1xf32> to vector<16x128xf32>
    %68 = vector.broadcast %cst_18 : f32 to vector<16x128xf32>
    %69 = arith.select %64, %67, %68 : vector<16x128xi1>, vector<16x128xf32>
    %70 = arith.addf %62, %69 : vector<16x128xf32>
    %c20_i32 = arith.constant 20 : i32
    %71 = vector.broadcast %c20_i32 : i32 to vector<16x128xi32>
    %72 = arith.cmpi eq, %7, %71 : vector<16x128xi32>
    %73 = arith.cmpf ogt, %41, %35 : vector<16x1xf32>
    %cst_19 = arith.constant 2.000000e+00 : f32
    %cst_20 = arith.constant 1.000000e+00 : f32
    %74 = vector.broadcast %cst_19 : f32 to vector<16x1xf32>
    %75 = vector.broadcast %cst_20 : f32 to vector<16x1xf32>
    %76 = arith.select %73, %74, %75 : vector<16x1xi1>, vector<16x1xf32>
    %cst_21 = arith.constant 0.000000e+00 : f32
    %77 = vector.shape_cast %76 : vector<16x1xf32> to vector<16x1xf32>
    %78 = vector.broadcast %77 : vector<16x1xf32> to vector<16x128xf32>
    %79 = vector.broadcast %cst_21 : f32 to vector<16x128xf32>
    %80 = arith.select %72, %78, %79 : vector<16x128xi1>, vector<16x128xf32>
    %81 = arith.addf %70, %80 : vector<16x128xf32>
    %82 = arith.truncf %81 : vector<16x128xf32> to vector<16x128xbf16>
    %c0_22 = arith.constant 0 : index
    %c0_23 = arith.constant 0 : index
    %83 = vector.load %arg4[%c0_22, %c0_23] : memref<16x128xbf16, #tpu.memory_space<vmem>>, vector<16x128xbf16>
    tpu.vector_store %arg4[%c0_22, %c0_23], %82 {strides = array<i32>} : memref<16x128xbf16, #tpu.memory_space<vmem>>, vector<16x128xbf16>,
    return
  }
  func.func @transform_0(%arg0: i32) -> (i32, i32) {
    %c0_i32 = arith.constant 0 : i32
    %c0_i32_0 = arith.constant 0 : i32
    return %arg0, %c0_i32 : i32, i32
  }
  func.func @transform_1(%arg0: i32) -> (i32, i32) {
    %c0_i32 = arith.constant 0 : i32
    %c0_i32_0 = arith.constant 0 : i32
    %c0_i32_1 = arith.constant 0 : i32
    return %c0_i32, %c0_i32_0 : i32, i32
  }
  func.func @transform_2(%arg0: i32) -> (i32, i32) {
    %c0_i32 = arith.constant 0 : i32
    %c0_i32_0 = arith.constant 0 : i32
    %c0_i32_1 = arith.constant 0 : i32
    return %c0_i32, %c0_i32_0 : i32, i32
  }
  func.func @transform_3(%arg0: i32) -> (i32, i32) {
    %c0_i32 = arith.constant 0 : i32
    %c0_i32_0 = arith.constant 0 : i32
    return %arg0, %c0_i32 : i32, i32
  }
}

</mosaic_0001>

<bundles_post_ra>
// kernel: tpu_custom_call.1
= control target key start
LH: loop header
LB: loop body
LE: loop exit
PB: predicated region body
PF: predicated region fallthrough
CT: control target
= control target key end

     0   :  { %8 = vsyncpa [#allocation3], 0  ;;  %s1269_s0 = inlined_call_operand.hbm [shape: f32[16,1024], index: 0, kind: input, shape index: {}]   ;;  %s1270_s1 = inlined_call_operand.hbm [shape: bf16[1024,128], index: 1, kind: input, shape index: {}]   ;;  %s1271_s2 = inlined_call_operand.vmem [shape: f32[1,128], index: 2, kind: input, shape index: {}]   ;;  %s1272_s3 = inlined_call_operand.hbm [shape: bf16[16,128], index: 3, kind: output, shape index: {}]  }
   0x1   :  { %9 = vsyncpa [#allocation6], 0 }
   0x2   :  { %10 = vsyncpa [#allocation4], 0  ;;  %s1169_s12 = smov [#allocation2]   ;;  %s1097_s16 = scalar_lea.hbm %s1269_s0, 2048 }
   0x3   :  { %s16_s13 = sshll.u32 %s1169_s12, 4  ;;  %p1098_p0 = scmp.ne.s32.totalorder %s1269_s0, %s1097_s16  ;;  %s17_s13 = int_to_ptr.vmem [resolvable:$true] %s16_s13 }
   0x4   :  { %p1101_p1 = scmp.lt.u32.totalorder %s1097_s16, %s1269_s0 }
   0x6   :  { %p1103_p2 = pnand %p1101_p1, %p1098_p0 }
   0x8   :  { %1106 = shalt.err (!%p1103_p2)
}
   0x9   :  { %s1107_s21 = scalar_lea.vmem %s17_s13, 2048  ;;  %p1112_p4 = scmp.lt.s32.totalorder %s17_s13, %s17_s13 }
   0xa   :  { %p1108_p3 = scmp.ne.s32.totalorder %s17_s13, %s1107_s21  ;;  %p1113_p5 = scmp.lt.s32.totalorder %s1107_s21, %s1107_s21 }
   0xc   :  { %p1114_p6 = por %p1113_p5, %p1112_p4 }
   0xe   :  { %p1115_p7 = pnand %p1114_p6, %p1108_p3 }
  0x10   :  { %1118 = shalt.err (!%p1115_p7)
}
  0x11   :  { %s1170_s22 = smov 1024   ;;  %s1171_s23 = smov 64  }
  0x12   :  { %22 = dma.hbm_to_vmem [thread:$0]  %s1269_s0, 2048, %s17_s13, [#allocation3], %s1170_s22, %s1170_s22, %s1171_s23  }
  0x13   :  { %s1172_s26 = smov [#allocation5]   ;;  %s1119_s30 = scalar_lea.hbm %s1270_s1, 8192 }
  0x14   :  { %s28_s27 = sshll.u32 %s1172_s26, 4  ;;  %p1120_p8 = scmp.ne.s32.totalorder %s1270_s1, %s1119_s30  ;;  %s29_s27 = int_to_ptr.vmem [resolvable:$true] %s28_s27 }
  0x15   :  { %p1123_p9 = scmp.lt.u32.totalorder %s1119_s30, %s1270_s1 }
  0x17   :  { %p1125_p10 = pnand %p1123_p9, %p1120_p8 }
  0x19   :  { %1128 = shalt.err (!%p1125_p10)
}
  0x1a   :  { %s1129_s8 = scalar_lea.vmem %s29_s27, 8192  ;;  %p1134_p12 = scmp.lt.s32.totalorder %s29_s27, %s29_s27 }
  0x1b   :  { %p1130_p11 = scmp.ne.s32.totalorder %s29_s27, %s1129_s8  ;;  %p1135_p13 = scmp.lt.s32.totalorder %s1129_s8, %s1129_s8 }
  0x1d   :  { %p1136_p0 = por %p1135_p13, %p1134_p12 }
  0x1f   :  { %p1137_p1 = pnand %p1136_p0, %p1130_p11 }
  0x21   :  { %1140 = shalt.err (!%p1137_p1)
}
  0x22   :  { %s1173_s0 = smov 4  }
  0x23   :  { %34 = dma.hbm_to_vmem [thread:$0]  %s1270_s1, 8192, %s29_s27, [#allocation6], %s1171_s23, %s1171_s23, %s1173_s0  }
  0x24   :  { %1163 = dma.done.wait [#allocation3], 2048  }
  0x25   :  { %1164 = vsyncadd [#allocation3], 4294965248 }
  0x26   :  { %1165 = dma.done.wait [#allocation6], 8192  }
  0x27   :  { %1166 = vsyncadd [#allocation6], 4294959104  ;;  %v1025_v0 = vld [vmem:[#allocation5 + $0x40] sm:$0xff]   ;;  %v1029_v4 = vld [vmem:[#allocation5 + $0x48] sm:$0xff]  }
  0x28   :  { %v1026_v1 = vld [vmem:[#allocation5 + $0xc0] sm:$0xff]   ;;  %930 = vmatprep.subr.bf16.mxu0 %v1025_v0  ;;  %v1030_v5 = vld [vmem:[#allocation5 + $0xc8] sm:$0xff]   ;;  %v1033_v8 = vld [vmem:[#allocation5 + $0x50] sm:$0xff]  }
  0x29   :  { %v1027_v2 = vld [vmem:[#allocation5] sm:$0xff]   ;;  %952 = vmatprep.subr.bf16.mxu1 %v1026_v1  ;;  %v1031_v6 = vld [vmem:[#allocation5 + $0x8] sm:$0xff]   ;;  %v1034_v9 = vld [vmem:[#allocation5 + $0xd0] sm:$0xff]  }
  0x2a   :  { %v1028_v3 = vld [vmem:[#allocation5 + $0x80] sm:$0xff]   ;;  %931 = vmatpush3.bf16.msra.mxu0 %v1027_v2  ;;  %v1032_v7 = vld [vmem:[#allocation5 + $0x88] sm:$0xff]   ;;  %v1035_v10 = vld [vmem:[#allocation5 + $0x10] sm:$0xff]  }
  0x2b   :  { %953 = vmatpush3.bf16.msra.mxu1 %v1028_v3  ;;  %932 = vmatprep.subr.bf16.mxu0 %v1029_v4  ;;  %v1036_v11 = vld [vmem:[#allocation5 + $0x90] sm:$0xff]   ;;  %v1037_v12 = vld [vmem:[#allocation5 + $0x58] sm:$0xff]   ;;  %v1041_v16 = vld [vmem:[#allocation5 + $0x60] sm:$0xff]  }
  0x2c   :  { %954 = vmatprep.subr.bf16.mxu1 %v1030_v5  ;;  %v1038_v13 = vld [vmem:[#allocation5 + $0xd8] sm:$0xff]   ;;  %v1042_v17 = vld [vmem:[#allocation5 + $0xe0] sm:$0xff]   ;;  %v1045_v20 = vld [vmem:[#allocation5 + $0x68] sm:$0xff]  }
  0x2d   :  { %v1039_v14 = vld [vmem:[#allocation5 + $0x18] sm:$0xff]   ;;  %v1043_v18 = vld [vmem:[#allocation5 + $0x20] sm:$0xff]   ;;  %v1046_v21 = vld [vmem:[#allocation5 + $0xe8] sm:$0xff]  }
  0x2e   :  { %933 = vmatpush3.bf16.msra.mxu0 %v1031_v6  ;;  %v1040_v15 = vld [vmem:[#allocation5 + $0x98] sm:$0xff]   ;;  %v1044_v19 = vld [vmem:[#allocation5 + $0xa0] sm:$0xff]   ;;  %v1047_v22 = vld [vmem:[#allocation5 + $0x28] sm:$0xff]  }
  0x2f   :  { %955 = vmatpush3.bf16.msra.mxu1 %v1032_v7  ;;  %934 = vmatprep.subr.bf16.mxu0 %v1033_v8  ;;  %v1048_v23 = vld [vmem:[#allocation5 + $0xa8] sm:$0xff]   ;;  %v1049_v24 = vld [vmem:[#allocation5 + $0x70] sm:$0xff]   ;;  %v1053_v28 = vld [vmem:[#allocation5 + $0x78] sm:$0xff]  }
  0x30   :  { %956 = vmatprep.subr.bf16.mxu1 %v1034_v9  ;;  %v1050_v25 = vld [vmem:[#allocation5 + $0xf0] sm:$0xff]   ;;  %v1054_v29 = vld [vmem:[#allocation5 + $0xf8] sm:$0xff]   ;;  %v45_v32 = vld [vmem:[#allocation2 + $0x8] sm:$0xff] }
  0x31   :  { %v1051_v26 = vld [vmem:[#allocation5 + $0x30] sm:$0xff]   ;;  %v1055_v30 = vld [vmem:[#allocation5 + $0x38] sm:$0xff]   ;;  %v53_v33 = vld [vmem:[#allocation2 + $0x48] sm:$0xff] }
  0x32   :  { %935 = vmatpush3.bf16.msra.mxu0 %v1035_v10  ;;  %v1052_v27 = vld [vmem:[#allocation5 + $0xb0] sm:$0xff]   ;;  %v1056_v31 = vld [vmem:[#allocation5 + $0xb8] sm:$0xff]   ;;  %v61_v35 = vpack.c.bf16 %v53_v33, %v45_v32  ;;  %v44_v37 = vld [vmem:[#allocation2] sm:$0xff] }
  0x33   :  { %957 = vmatpush3.bf16.msra.mxu1 %v1036_v11  ;;  %936 = vmatprep.subr.bf16.mxu0 %v1037_v12  ;;  %v47_v34 = vld [vmem:[#allocation2 + $0x18] sm:$0xff]  ;;  %v52_v38 = vld [vmem:[#allocation2 + $0x40] sm:$0xff]  ;;  %v46_v41 = vld [vmem:[#allocation2 + $0x10] sm:$0xff] }
  0x34   :  { %958 = vmatprep.subr.bf16.mxu1 %v1038_v13  ;;  %v55_v36 = vld [vmem:[#allocation2 + $0x58] sm:$0xff]  ;;  %v60_v40 = vpack.c.bf16 %v52_v38, %v44_v37  ;;  %v54_v42 = vld [vmem:[#allocation2 + $0x50] sm:$0xff]  ;;  %619 = vmatprep.mubr.bf16.mxu0 %v61_v35  ;;  %v1057_v44 = vld [vmem:[#allocation5 + $0x140] sm:$0xff]  }
  0x35   :  { %v63_v39 = vpack.c.bf16 %v55_v36, %v47_v34  ;;  %v62_v43 = vpack.c.bf16 %v54_v42, %v46_v41  ;;  %v1058_v45 = vld [vmem:[#allocation5 + $0x1c0] sm:$0xff]   ;;  %v1061_v48 = vld [vmem:[#allocation5 + $0x148] sm:$0xff]   ;;  %v1065_v52 = vld [vmem:[#allocation5 + $0x150] sm:$0xff]   ;;  %v751_v41 = vlaneseq }
  0x36   :  { %937 = vmatpush3.bf16.msra.mxu0 %v1039_v14  ;;  %v1059_v46 = vld [vmem:[#allocation5 + $0x100] sm:$0xff]   ;;  %v1062_v49 = vld [vmem:[#allocation5 + $0x1c8] sm:$0xff]   ;;  %v1066_v53 = vld [vmem:[#allocation5 + $0x1d0] sm:$0xff]  }
  0x37   :  { %959 = vmatpush3.bf16.msra.mxu1 %v1040_v15  ;;  %938 = vmatprep.subr.bf16.mxu0 %v1041_v16  ;;  %v1060_v47 = vld [vmem:[#allocation5 + $0x180] sm:$0xff]   ;;  %v1063_v50 = vld [vmem:[#allocation5 + $0x108] sm:$0xff]   ;;  %v1067_v54 = vld [vmem:[#allocation5 + $0x110] sm:$0xff]  }
  0x38   :  { %960 = vmatprep.subr.bf16.mxu1 %v1042_v17  ;;  %660 = vmatprep.mubr.bf16.mxu1 %v63_v39  ;;  %v1064_v51 = vld [vmem:[#allocation5 + $0x188] sm:$0xff]   ;;  %v1068_v55 = vld [vmem:[#allocation5 + $0x190] sm:$0xff]   ;;  %v1069_v56 = vld [vmem:[#allocation5 + $0x158] sm:$0xff]  }
  0x39   :  { %v1070_v57 = vld [vmem:[#allocation5 + $0x1d8] sm:$0xff]   ;;  %v1073_v60 = vld [vmem:[#allocation5 + $0x160] sm:$0xff]   ;;  %v1077_v0 = vld [vmem:[#allocation5 + $0x168] sm:$0xff]  }
  0x3a   :  { %939 = vmatpush3.bf16.msra.mxu0 %v1043_v18  ;;  %v1071_v58 = vld [vmem:[#allocation5 + $0x118] sm:$0xff]   ;;  %v1074_v61 = vld [vmem:[#allocation5 + $0x1e0] sm:$0xff]   ;;  %v1078_v1 = vld [vmem:[#allocation5 + $0x1e8] sm:$0xff]  }
  0x3b   :  { %961 = vmatpush3.bf16.msra.mxu1 %v1044_v19  ;;  %940 = vmatprep.subr.bf16.mxu0 %v1045_v20  ;;  %v1072_v59 = vld [vmem:[#allocation5 + $0x198] sm:$0xff]   ;;  %v1075_v62 = vld [vmem:[#allocation5 + $0x120] sm:$0xff]   ;;  %v1079_v2 = vld [vmem:[#allocation5 + $0x128] sm:$0xff]  }
  0x3c   :  { %962 = vmatprep.subr.bf16.mxu1 %v1046_v21  ;;  %v1076_v63 = vld [vmem:[#allocation5 + $0x1a0] sm:$0xff]   ;;  %v1080_v3 = vld [vmem:[#allocation5 + $0x1a8] sm:$0xff]   ;;  %v1081_v4 = vld [vmem:[#allocation5 + $0x170] sm:$0xff]  }
  0x3d   :  { %v1082_v5 = vld [vmem:[#allocation5 + $0x1f0] sm:$0xff]   ;;  %v1085_v8 = vld [vmem:[#allocation5 + $0x178] sm:$0xff]   ;;  %v49_v12 = vld [vmem:[#allocation2 + $0x28] sm:$0xff] }
  0x3e   :  { %941 = vmatpush3.bf16.msra.mxu0 %v1047_v22  ;;  %v1083_v6 = vld [vmem:[#allocation5 + $0x130] sm:$0xff]   ;;  %v1086_v9 = vld [vmem:[#allocation5 + $0x1f8] sm:$0xff]   ;;  %v57_v13 = vld [vmem:[#allocation2 + $0x68] sm:$0xff] }
  0x3f   :  { %963 = vmatpush3.bf16.msra.mxu1 %v1048_v23  ;;  %942 = vmatprep.subr.bf16.mxu0 %v1049_v24  ;;  %v1084_v7 = vld [vmem:[#allocation5 + $0x1b0] sm:$0xff]   ;;  %v1087_v10 = vld [vmem:[#allocation5 + $0x138] sm:$0xff]   ;;  %v65_v16 = vpack.c.bf16 %v57_v13, %v49_v12  ;;  %v48_v18 = vld [vmem:[#allocation2 + $0x20] sm:$0xff] }
  0x40   :  { %964 = vmatprep.subr.bf16.mxu1 %v1050_v25  ;;  %v1088_v11 = vld [vmem:[#allocation5 + $0x1b8] sm:$0xff]   ;;  %v56_v19 = vld [vmem:[#allocation2 + $0x60] sm:$0xff]  ;;  %v50_v20 = vld [vmem:[#allocation2 + $0x30] sm:$0xff] }
  0x41   :  { %v51_v14 = vld [vmem:[#allocation2 + $0x38] sm:$0xff]  ;;  %v64_v21 = vpack.c.bf16 %v56_v19, %v48_v18  ;;  %v58_v22 = vld [vmem:[#allocation2 + $0x70] sm:$0xff] }
  0x42   :  { %943 = vmatpush3.bf16.msra.mxu0 %v1051_v26  ;;  %v59_v15 = vld [vmem:[#allocation2 + $0x78] sm:$0xff]  ;;  %v66_v23 = vpack.c.bf16 %v58_v22, %v50_v20  ;;  %v856_v26 = vld [vmem:[%s1271_s2] ss:$0 sm:$0xff]  ;;  %s1175_s2 = smov [#allocation7]  }
  0x43   :  { %965 = vmatpush3.bf16.msra.mxu1 %v1052_v27  ;;  %944 = vmatprep.subr.bf16.mxu0 %v1053_v28  ;;  %v67_v17 = vpack.c.bf16 %v59_v15, %v51_v14  ;;  %s843_s12 = sshll.u32 %s1175_s2, 4  ;;  %s844_s12 = int_to_ptr.vmem [resolvable:$true] %s843_s12 }
  0x44   :  { %966 = vmatprep.subr.bf16.mxu1 %v1054_v29  ;;  %s1141_s13 = scalar_lea.vmem %s844_s12, 128  ;;  %p1146_p3 = scmp.lt.s32.totalorder %s844_s12, %s844_s12 }
  0x45   :  { %p1142_p2 = scmp.ne.s32.totalorder %s844_s12, %s1141_s13  ;;  %p1147_p4 = scmp.lt.s32.totalorder %s1141_s13, %s1141_s13 }
  0x46   :  { %945 = vmatpush3.bf16.msra.mxu0 %v1055_v30 }
  0x47   :  { %967 = vmatpush3.bf16.msra.mxu1 %v1056_v31  ;;  %974 = vmatprep.subr.bf16.mxu0 %v1057_v44  ;;  %p1148_p5 = por %p1147_p4, %p1146_p3 }
  0x48   :  { %996 = vmatprep.subr.bf16.mxu1 %v1058_v45  ;;  %v1227_v45 = vand.u32 127, %v751_v41 }
  0x49   :  { %620 = vmatmul.mubr.bf16.vlgmr.msra.gmra.mrb[0].mxu0 %v60_v40  ;;  %p1149_p6 = pnand %p1148_p5, %p1142_p2 }
  0x4a   :  { %661 = vmatmul.mubr.bf16.vlgmr.msra.gmra.mrb[0].mxu1 %v62_v43  ;;  %975 = vmatpush3.bf16.msra.mxu0 %v1059_v46  ;;  %vm753_vm0 = vcmp.lt.s32.totalorder %v1227_v45, 3  ;;  %vm776_vm1 = vcmp.eq.s32.totalorder %v1227_v45, 0  ;;  %vm783_vm2 = vcmp.eq.s32.totalorder %v1227_v45, 1  ;;  %vm790_vm3 = vcmp.eq.s32.totalorder %v1227_v45, 2 }
  0x4b   :  { %997 = vmatpush3.bf16.msra.mxu1 %v1060_v47  ;;  %976 = vmatprep.subr.bf16.mxu0 %v1061_v48  ;;  %vm797_vm4 = vcmp.eq.s32.totalorder %v1227_v45, 16  ;;  %vm802_vm5 = vcmp.eq.s32.totalorder %v1227_v45, 17  ;;  %vm807_vm6 = vcmp.eq.s32.totalorder %v1227_v45, 18  ;;  %vm812_vm7 = vcmp.eq.s32.totalorder %v1227_v45, 19 }
  0x4c   :  { %998 = vmatprep.subr.bf16.mxu1 %v1062_v49  ;;  %701 = vmatprep.mubr.bf16.mxu0 %v65_v16  ;;  %vm819_vm9 = vcmp.eq.s32.totalorder %v1227_v45, 20 }
  0x4d   :  { %742 = vmatprep.mubr.bf16.mxu1 %v67_v17 }
  0x4e   :  { %977 = vmatpush3.bf16.msra.mxu0 %v1063_v50 }
  0x4f   :  { %999 = vmatpush3.bf16.msra.mxu1 %v1064_v51  ;;  %978 = vmatprep.subr.bf16.mxu0 %v1065_v52 }
  0x50   :  { %1000 = vmatprep.subr.bf16.mxu1 %v1066_v53 }
  0x52   :  { %979 = vmatpush3.bf16.msra.mxu0 %v1067_v54 }
  0x53   :  { %1001 = vmatpush3.bf16.msra.mxu1 %v1068_v55  ;;  %980 = vmatprep.subr.bf16.mxu0 %v1069_v56 }
  0x54   :  { %1002 = vmatprep.subr.bf16.mxu1 %v1070_v57 }
  0x56   :  { %981 = vmatpush3.bf16.msra.mxu0 %v1071_v58 }
  0x57   :  { %1003 = vmatpush3.bf16.msra.mxu1 %v1072_v59  ;;  %982 = vmatprep.subr.bf16.mxu0 %v1073_v60 }
  0x58   :  { %1004 = vmatprep.subr.bf16.mxu1 %v1074_v61 }
  0x5a   :  { %983 = vmatpush3.bf16.msra.mxu0 %v1075_v62 }
  0x5b   :  { %1005 = vmatpush3.bf16.msra.mxu1 %v1076_v63  ;;  %984 = vmatprep.subr.bf16.mxu0 %v1077_v0 }
  0x5c   :  { %1006 = vmatprep.subr.bf16.mxu1 %v1078_v1 }
  0x5e   :  { %985 = vmatpush3.bf16.msra.mxu0 %v1079_v2 }
  0x5f   :  { %1007 = vmatpush3.bf16.msra.mxu1 %v1080_v3  ;;  %986 = vmatprep.subr.bf16.mxu0 %v1081_v4 }
  0x60   :  { %1008 = vmatprep.subr.bf16.mxu1 %v1082_v5 }
  0x62   :  { %987 = vmatpush3.bf16.msra.mxu0 %v1083_v6 }
  0x63   :  { %1009 = vmatpush3.bf16.msra.mxu1 %v1084_v7  ;;  %988 = vmatprep.subr.bf16.mxu0 %v1085_v8 }
  0x64   :  { %1010 = vmatprep.subr.bf16.mxu1 %v1086_v9 }
  0x66   :  { %989 = vmatpush3.bf16.msra.mxu0 %v1087_v10 }
  0x67   :  { %1011 = vmatpush3.bf16.msra.mxu1 %v1088_v11 }
  0x69   :  { %702 = vmatmul.mubr.bf16.vlgmr.msra.gmra.mrb[4].mxu0 %v64_v21 }
  0x6a   :  { %743 = vmatmul.mubr.bf16.vlgmr.msra.gmra.mrb[4].mxu1 %v66_v23 }
 0x11c   :  { %v946_v24 = vpop.f32.mrb[0].mxu0 }
 0x11d   :  { %v968_v25 = vpop.f32.mrb[0].mxu1  ;;  %v947_v27 = vpop.f32.mrb[1].mxu0 }
 0x11e   :  { %v948_v28 = vadd.f32 %v947_v27, %v946_v24  ;;  %v969_v29 = vpop.f32.mrb[1].mxu1  ;;  %v949_v30 = vpop.f32.mrb[2].mxu0 }
 0x11f   :  { %v970_v31 = vadd.f32 %v969_v29, %v968_v25  ;;  %v971_v32 = vpop.f32.mrb[2].mxu1  ;;  %v950_v33 = vpop.f32.mrb[3].mxu0 }
 0x120   :  { %v622_v34 = vadd.f32 %v948_v28, %v856_v26  ;;  %v951_v35 = vadd.f32 %v950_v33, %v949_v30  ;;  %v972_v36 = vpop.f32.mrb[3].mxu1 }
 0x121   :  { %v973_v37 = vadd.f32 %v972_v36, %v971_v32 }
 0x122   :  { %v663_v38 = vadd.f32 %v970_v31, %v622_v34  ;;  %v625_v39 = vadd.f32 %v951_v35, %v856_v26 }
 0x124   :  { %v666_v40 = vadd.f32 %v973_v37, %v625_v39 }
 0x13c   :  { %v990_v42 = vpop.f32.mrb[4].mxu0 }
 0x13d   :  { %v1012_v43 = vpop.f32.mrb[4].mxu1  ;;  %v991_v44 = vpop.f32.mrb[5].mxu0 }
 0x13e   :  { %v992_v46 = vadd.f32 %v991_v44, %v990_v42  ;;  %v1013_v47 = vpop.f32.mrb[5].mxu1  ;;  %v993_v48 = vpop.f32.mrb[6].mxu0 }
 0x13f   :  { %v1014_v49 = vadd.f32 %v1013_v47, %v1012_v43  ;;  %v1015_v50 = vpop.f32.mrb[6].mxu1  ;;  %v994_v51 = vpop.f32.mrb[7].mxu0 }
 0x140   :  { %v704_v52 = vadd.f32 %v992_v46, %v663_v38  ;;  %v995_v53 = vadd.f32 %v994_v51, %v993_v48  ;;  %v1016_v54 = vpop.f32.mrb[7].mxu1 }
 0x141   :  { %v1017_v55 = vadd.f32 %v1016_v54, %v1015_v50 }
 0x142   :  { %v745_v56 = vadd.f32 %v1014_v49, %v704_v52  ;;  %v707_v57 = vadd.f32 %v995_v53, %v666_v40  ;;  %v1174_v40 = vmov 1.0  }
 0x144   :  { %v748_v58 = vadd.f32 %v1017_v55, %v707_v57  ;;  %v754_v59 = vsel %vm753_vm0, %v745_v56, -inf }
 0x145   :  { %756 = vmax.xlane.f32.xlu0 %v754_v59 }
 0x146   :  { %v755_v60 = vsel %vm753_vm0, %v748_v58, -inf }
 0x149   :  { %758 = vmax.xlane.f32.xlu0 %v755_v60 }
 0x1d2   :  { %v757_v61 = vpop.xlane.xlu0 %756 }
 0x1d3   :  { %v760_v62 = vsub.f32 %v745_v56, %v757_v61 }
 0x1d5   :  { %v762_v63 = vmul.f32 1.442695, %v760_v62 }
 0x1d6   :  { %v759_v0 = vpop.xlane.xlu0 %758 }
 0x1d7   :  { %1089 = vpow2.f32 %v762_v63  ;;  %v761_v1 = vsub.f32 %v748_v58, %v759_v0 }
 0x1d9   :  { %v764_v2 = vmul.f32 1.442695, %v761_v1 }
 0x1db   :  { %1091 = vpow2.f32 %v764_v2 }
 0x1e1   :  { %v1090_v3 = vpop.eup %1089 }
 0x1e2   :  { %v766_v4 = vsel %vm753_vm0, %v1090_v3, 0.0 }
 0x1e3   :  { %768 = vadd.xlane.f32.xlu1 %v766_v4 }
 0x1e5   :  { %v1092_v5 = vpop.eup %1091 }
 0x1e6   :  { %v767_v6 = vsel %vm753_vm0, %v1092_v5, 0.0 }
 0x1e7   :  { %770 = vadd.xlane.f32.xlu1 %v767_v6 }
 0x270   :  { %v769_v7 = vpop.xlane.xlu1 %768 }
 0x271   :  { %1093 = vrcp.f32 %v769_v7 }
 0x274   :  { %v771_v8 = vpop.xlane.xlu1 %770 }
 0x275   :  { %1095 = vrcp.f32 %v771_v8 }
 0x27b   :  { %v1094_v9 = vpop.eup %1093 }
 0x27c   :  { %v774_v10 = vmul.f32 %v1094_v9, %v766_v4 }
 0x27e   :  { %v777_v11 = vsel %vm776_vm1, %v774_v10, 0.0  ;;  %v784_v14 = vsel %vm783_vm2, %v774_v10, 0.0  ;;  %v791_v16 = vsel %vm790_vm3, %v774_v10, 0.0 }
 0x27f   :  { %v1096_v12 = vpop.eup %1095  ;;  %779 = vadd.xlane.f32.xlu0 %v777_v11 }
 0x280   :  { %v775_v13 = vmul.f32 %v1096_v12, %v767_v6 }
 0x282   :  { %v778_v15 = vsel %vm776_vm1, %v775_v13, 0.0  ;;  %v785_v17 = vsel %vm783_vm2, %v775_v13, 0.0  ;;  %v792_v18 = vsel %vm790_vm3, %v775_v13, 0.0 }
 0x283   :  { %786 = vadd.xlane.f32.xlu0 %v784_v14  ;;  %781 = vadd.xlane.f32.xlu1 %v778_v15 }
 0x287   :  { %793 = vadd.xlane.f32.xlu0 %v791_v16  ;;  %788 = vadd.xlane.f32.xlu1 %v785_v17 }
 0x28b   :  { %795 = vadd.xlane.f32.xlu1 %v792_v18 }
 0x30c   :  { %v780_v19 = vpop.xlane.xlu0 %779 }
 0x30d   :  { %v798_v20 = vsel %vm797_vm4, %v780_v19, 0.0 }
 0x30e   :  { %v800_v24 = vadd.f32 %v798_v20, %v745_v56 }
 0x310   :  { %v782_v21 = vpop.xlane.xlu1 %781  ;;  %v787_v22 = vpop.xlane.xlu0 %786 }
 0x311   :  { %v803_v23 = vsel %vm802_vm5, %v787_v22, 0.0  ;;  %v799_v25 = vsel %vm797_vm4, %v782_v21, 0.0 }
 0x312   :  { %v805_v26 = vadd.f32 %v803_v23, %v800_v24  ;;  %v801_v32 = vadd.f32 %v799_v25, %v748_v58 }
 0x314   :  { %v789_v27 = vpop.xlane.xlu1 %788  ;;  %v794_v28 = vpop.xlane.xlu0 %793 }
 0x315   :  { %v804_v29 = vsel %vm802_vm5, %v789_v27, 0.0  ;;  %v808_v30 = vsel %vm807_vm6, %v794_v28, 0.0  ;;  %v813_v31 = vmax.f32 %v787_v22, %v794_v28  ;;  %vm820_vm8 = vcmp.gt.f32.partialorder %v794_v28, %v787_v22 }
 0x316   :  { %v810_v33 = vadd.f32 %v808_v30, %v805_v26  ;;  %v806_v35 = vadd.f32 %v804_v29, %v801_v32  ;;  %v822_v41 = vsel %vm820_vm8, 2.0, %v1174_v40 }
 0x317   :  { %v815_v34 = vsel %vm812_vm7, %v813_v31, 0.0  ;;  %v824_v47 = vsel %vm819_vm9, %v822_v41, 0.0 }
 0x318   :  { %v796_v36 = vpop.xlane.xlu1 %795  ;;  %v817_v39 = vadd.f32 %v815_v34, %v810_v33 }
 0x319   :  { %v809_v37 = vsel %vm807_vm6, %v796_v36, 0.0  ;;  %v814_v38 = vmax.f32 %v789_v27, %v796_v36  ;;  %vm821_vm10 = vcmp.gt.f32.partialorder %v796_v36, %v789_v27 }
 0x31a   :  { %v811_v42 = vadd.f32 %v809_v37, %v806_v35  ;;  %v823_v43 = vsel %vm821_vm10, 2.0, %v1174_v40  ;;  %v826_v49 = vadd.f32 %v824_v47, %v817_v39 }
 0x31b   :  { %v816_v44 = vsel %vm812_vm7, %v814_v38, 0.0  ;;  %v825_v48 = vsel %vm819_vm9, %v823_v43, 0.0 }
 0x31c   :  { %v818_v46 = vadd.f32 %v816_v44, %v811_v42 }
 0x31e   :  { %v827_v50 = vadd.f32 %v825_v48, %v818_v46 }
 0x320   :  { %v928_v51 = vpack.c.bf16 %v827_v50, %v826_v49 }
 0x322   :  { %929 = vst [vmem:[#allocation7] sm:$0xff] %v928_v51  }
 0x323   :  { %1152 = shalt.err (!%p1149_p6)
}
 0x324   :  { %s1153_s16 = scalar_lea.hbm %s1272_s3, 128 }
 0x325   :  { %p1154_p7 = scmp.ne.s32.totalorder %s1272_s3, %s1153_s16  ;;  %p1157_p8 = scmp.lt.u32.totalorder %s1153_s16, %s1272_s3 }
 0x327   :  { %p1159_p9 = pnand %p1157_p8, %p1154_p7 }
 0x329   :  { %1162 = shalt.err (!%p1159_p9)
}
 0x32a   :  { %849 = dma.vmem_to_hbm [thread:$0]  %s844_s12, 128, %s1272_s3, [#allocation4], %s1171_s23, %s1171_s23, %s1173_s0  }
 0x32b   :  { %1167 = dma.done.wait [#allocation4], 128  }
 0x32c   :  { %1168 = vsyncadd [#allocation4], 4294967168 }
 0x32d   :  { %853 = vsyncpa [#allocation3], 1 }
 0x32e   :  { %854 = vsyncpa [#allocation6], 1 }
 0x32f   :  { %855 = vsyncpa [#allocation4], 1 }

</bundles_post_ra>
